<compile_context>
chip_gen: v6e
topology: v6e:2x2x1
jax: 0.10.0
libtpu: 0.0.40
codegen_flags: <defaults>
</compile_context>

<pallas_src>
import jax
import jax.numpy as jnp
from jax.experimental import pallas as pl
from jax.experimental.pallas import tpu as pltpu

IMG_DIM = 28 * 28  # 784
H1, H2, H3 = 128, 256, 128


def _round_up(n, m):
    return ((n + m - 1) // m) * m


def critic_kernel(x_ref,
                  w1_ref, b1_ref,
                  w2_ref, b2_ref,
                  w3_ref, b3_ref,
                  w4_ref, b4_ref,
                  o_ref):
    leak = jnp.float32(0.1)

    # bf16 operands into the MXU, f32 accumulation; VPU math stays f32.
    x = x_ref[...].astype(jnp.bfloat16)

    # Linear(784 -> 128) + LeakyReLU(0.1)
    h = jnp.dot(x, w1_ref[...], preferred_element_type=jnp.float32) + b1_ref[...]
    h = jnp.where(h > 0, h, leak * h)

    # Linear(128 -> 256) + LeakyReLU(0.1)
    h = jnp.dot(h.astype(jnp.bfloat16), w2_ref[...],
                preferred_element_type=jnp.float32) + b2_ref[...]
    h = jnp.where(h > 0, h, leak * h)

    # Dropout(0.3): identity in eval mode.
    # TODO(synk): training-mode dropout (pltpu.prng_seed + stateful_bernoulli + 1/(1-p) scale) omitted.

    # Linear(256 -> 128) + LeakyReLU(0.1)
    h = jnp.dot(h.astype(jnp.bfloat16), w3_ref[...],
                preferred_element_type=jnp.float32) + b3_ref[...]
    h = jnp.where(h > 0, h, leak * h)

    # Linear(128 -> 1): VPU multiply + lane reduction (avoids a lane-sparse MXU pass).
    o = jnp.sum(h * w4_ref[...], axis=-1, keepdims=True) + b4_ref[...]
    o_ref[...] = o.astype(o_ref.dtype)


def critic_forward(x, params, tile_b=None):
    (w1, b1, w2, b2, w3, b3, w4, b4) = params
    B = x.shape[0]

    # Tile the batch: large batches use 256-row tiles (full MXU rows on v6e/v7x,
    # 2x128 on v5e); small batches use one tile rounded up to the sublane (8).
    if tile_b is None:
        tile_b = 256 if B >= 256 else _round_up(B, 8)
    tile_b = _round_up(min(tile_b, _round_up(B, 8)), 8)

    padded_b = _round_up(B, tile_b)
    if padded_b != B:
        x = jnp.pad(x, ((0, padded_b - B), (0, 0)))
    grid = (padded_b // tile_b,)

    def full_block(shape):
        # Whole-array block, constant block index -> stays resident in VMEM.
        return pl.BlockSpec(shape, lambda i: (0, 0))

    flops = 2 * padded_b * (IMG_DIM * H1 + H1 * H2 + H2 * H3 + H3)
    bytes_accessed = (int(x.size) * x.dtype.itemsize
                      + sum(int(p.size) * p.dtype.itemsize for p in params)
                      + padded_b * 4)

    out = pl.pallas_call(
        critic_kernel,
        out_shape=jax.ShapeDtypeStruct((padded_b, 1), jnp.float32),
        grid=grid,
        in_specs=[
            pl.BlockSpec((tile_b, IMG_DIM), lambda i: (i, 0)),  # x: pipelined batch tiles
            full_block(w1.shape), full_block(b1.shape),
            full_block(w2.shape), full_block(b2.shape),
            full_block(w3.shape), full_block(b3.shape),
            full_block(w4.shape), full_block(b4.shape),
        ],
        out_specs=pl.BlockSpec((tile_b, 1), lambda i: (i, 0)),
        compiler_params=pltpu.CompilerParams(
            dimension_semantics=("parallel",)),
        cost_estimate=pl.CostEstimate(
            flops=flops, transcendentals=0, bytes_accessed=bytes_accessed),
    )(x, w1, b1, w2, b2, w3, b3, w4, b4)

    return out[:B]


def init_params(key):
    """Deterministic init mimicking PyTorch Linear default (uniform +/- 1/sqrt(fan_in))."""
    dims = [(IMG_DIM, H1), (H1, H2), (H2, H3), (H3, 1)]
    keys = jax.random.split(key, 2 * len(dims))
    raw = []
    for i, (fan_in, fan_out) in enumerate(dims):
        bound = 1.0 / (fan_in ** 0.5)
        w = jax.random.uniform(keys[2 * i], (fan_in, fan_out),
                               minval=-bound, maxval=bound, dtype=jnp.float32)
        b = jax.random.uniform(keys[2 * i + 1], (1, fan_out),
                               minval=-bound, maxval=bound, dtype=jnp.float32)
        raw.append((w, b))
    (w1, b1), (w2, b2), (w3, b3), (w4, b4) = raw
    # bf16 weight storage halves the dominant HBM traffic; MXU takes bf16 natively.
    w1 = w1.astype(jnp.bfloat16)
    w2 = w2.astype(jnp.bfloat16)
    w3 = w3.astype(jnp.bfloat16)
    # Final layer is computed as a lane reduction: store as (1, 128) f32.
    w4 = w4.T.astype(jnp.float32)
    return (w1, b1, w2, b2, w3, b3, w4, b4)


def critic_reference(x, params):
    """Pure-JAX reference using the same bf16 operand precision as the kernel."""
    (w1, b1, w2, b2, w3, b3, w4, b4) = params
    lrelu = lambda h: jnp.where(h > 0, h, 0.1 * h)
    h = lrelu(jnp.dot(x.astype(jnp.bfloat16), w1,
                      preferred_element_type=jnp.float32) + b1)
    h = lrelu(jnp.dot(h.astype(jnp.bfloat16), w2,
                      preferred_element_type=jnp.float32) + b2)
    h = lrelu(jnp.dot(h.astype(jnp.bfloat16), w3,
                      preferred_element_type=jnp.float32) + b3)
    return jnp.sum(h * w4, axis=-1, keepdims=True) + b4


if __name__ == "__main__":
    key = jax.random.PRNGKey(0)
    kx, kp = jax.random.split(key)

    batch = 16
    x = jax.random.normal(kx, (batch, IMG_DIM), dtype=jnp.float32)
    params = init_params(kp)

    # tile_b=8 -> grid=(2,): exercises the pipelined batch grid with resident weights
    # while keeping the demo shapes small.
    out = critic_forward(x, params, tile_b=8)
    out = jax.block_until_ready(out)

    ref = critic_reference(x, params)
    assert out.shape == (batch, 1)
    assert jnp.allclose(out, ref, atol=1e-3, rtol=1e-3), "mismatch vs reference"

    print("KERNEL_OK")
</pallas_src>

<mosaic_0001>
module attributes {stable_mosaic.version = 11 : i64} {
  func.func @critic_kernel(%arg0: i32, %arg1: memref<8x784xf32, #tpu.memory_space<vmem>>, %arg2: memref<784x128xbf16, #tpu.memory_space<vmem>>, %arg3: memref<1x128xf32, #tpu.memory_space<vmem>>, %arg4: memref<128x256xbf16, #tpu.memory_space<vmem>>, %arg5: memref<1x256xf32, #tpu.memory_space<vmem>>, %arg6: memref<256x128xbf16, #tpu.memory_space<vmem>>, %arg7: memref<1x128xf32, #tpu.memory_space<vmem>>, %arg8: memref<1x128xf32, #tpu.memory_space<vmem>>, %arg9: memref<1x1xf32, #tpu.memory_space<vmem>>, %arg10: memref<8x1xf32, #tpu.memory_space<vmem>>) attributes {dimension_semantics = [#tpu.dimension_semantics<parallel>], iteration_bounds = array<i64: 2>, scalar_prefetch = 0 : i64, scratch_operands = 0 : i64, tpu.core_type = #tpu.core_type<tc>, window_params = [{transform_indices = @transform_0, window_bounds = array<i64: 8, 784>}, {pipeline_mode = #tpu.pipeline_mode<synchronous>, transform_indices = @transform_1, window_bounds = array<i64: 784, 128>}, {pipeline_mode = #tpu.pipeline_mode<synchronous>, transform_indices = @transform_2, window_bounds = array<i64: 1, 128>}, {pipeline_mode = #tpu.pipeline_mode<synchronous>, transform_indices = @transform_3, window_bounds = array<i64: 128, 256>}, {pipeline_mode = #tpu.pipeline_mode<synchronous>, transform_indices = @transform_4, window_bounds = array<i64: 1, 256>}, {pipeline_mode = #tpu.pipeline_mode<synchronous>, transform_indices = @transform_5, window_bounds = array<i64: 256, 128>}, {pipeline_mode = #tpu.pipeline_mode<synchronous>, transform_indices = @transform_6, window_bounds = array<i64: 1, 128>}, {pipeline_mode = #tpu.pipeline_mode<synchronous>, transform_indices = @transform_7, window_bounds = array<i64: 1, 128>}, {pipeline_mode = #tpu.pipeline_mode<synchronous>, transform_indices = @transform_8, window_bounds = array<i64: 1, 1>}, {transform_indices = @transform_9, window_bounds = array<i64: 8, 1>}]} {
    %c0 = arith.constant 0 : index
    %c0_0 = arith.constant 0 : index
    %0 = vector.load %arg1[%c0, %c0_0] : memref<8x784xf32, #tpu.memory_space<vmem>>, vector<8x784xf32>
    %1 = arith.truncf %0 : vector<8x784xf32> to vector<8x784xbf16>
    %c0_1 = arith.constant 0 : index
    %c0_2 = arith.constant 0 : index
    %2 = vector.load %arg2[%c0_1, %c0_2] : memref<784x128xbf16, #tpu.memory_space<vmem>>, vector<784x128xbf16>
    %cst = arith.constant dense<0.000000e+00> : vector<8x128xf32>
    %3 = tpu.matmul %1, %2, %cst {dimension_numbers = #tpu.dot_dimension_numbers<[1], [0], [0], [1], [0, 0, 1, 1], [], []>} : vector<8x784xbf16>, vector<784x128xbf16>, vector<8x128xf32> -> vector<8x128xf32>
    %c0_3 = arith.constant 0 : index
    %c0_4 = arith.constant 0 : index
    %4 = vector.load %arg3[%c0_3, %c0_4] : memref<1x128xf32, #tpu.memory_space<vmem>>, vector<1x128xf32>
    %5 = vector.broadcast %4 : vector<1x128xf32> to vector<8x128xf32>
    %6 = arith.addf %3, %5 : vector<8x128xf32>
    %cst_5 = arith.constant 0.000000e+00 : f32
    %7 = vector.broadcast %cst_5 : f32 to vector<8x128xf32>
    %8 = arith.cmpf ogt, %6, %7 : vector<8x128xf32>
    %cst_6 = arith.constant 1.000000e-01 : f32
    %9 = vector.broadcast %cst_6 : f32 to vector<8x128xf32>
    %10 = arith.mulf %9, %6 : vector<8x128xf32>
    %11 = arith.select %8, %6, %10 : vector<8x128xi1>, vector<8x128xf32>
    %12 = arith.truncf %11 : vector<8x128xf32> to vector<8x128xbf16>
    %c0_7 = arith.constant 0 : index
    %c0_8 = arith.constant 0 : index
    %13 = vector.load %arg4[%c0_7, %c0_8] : memref<128x256xbf16, #tpu.memory_space<vmem>>, vector<128x256xbf16>
    %cst_9 = arith.constant dense<0.000000e+00> : vector<8x256xf32>
    %14 = tpu.matmul %12, %13, %cst_9 {dimension_numbers = #tpu.dot_dimension_numbers<[1], [0], [0], [1], [0, 0, 1, 1], [], []>} : vector<8x128xbf16>, vector<128x256xbf16>, vector<8x256xf32> -> vector<8x256xf32>
    %c0_10 = arith.constant 0 : index
    %c0_11 = arith.constant 0 : index
    %15 = vector.load %arg5[%c0_10, %c0_11] : memref<1x256xf32, #tpu.memory_space<vmem>>, vector<1x256xf32>
    %16 = vector.broadcast %15 : vector<1x256xf32> to vector<8x256xf32>
    %17 = arith.addf %14, %16 : vector<8x256xf32>
    %cst_12 = arith.constant 0.000000e+00 : f32
    %18 = vector.broadcast %cst_12 : f32 to vector<8x256xf32>
    %19 = arith.cmpf ogt, %17, %18 : vector<8x256xf32>
    %cst_13 = arith.constant 1.000000e-01 : f32
    %20 = vector.broadcast %cst_13 : f32 to vector<8x256xf32>
    %21 = arith.mulf %20, %17 : vector<8x256xf32>
    %22 = arith.select %19, %17, %21 : vector<8x256xi1>, vector<8x256xf32>
    %23 = arith.truncf %22 : vector<8x256xf32> to vector<8x256xbf16>
    %c0_14 = arith.constant 0 : index
    %c0_15 = arith.constant 0 : index
    %24 = vector.load %arg6[%c0_14, %c0_15] : memref<256x128xbf16, #tpu.memory_space<vmem>>, vector<256x128xbf16>
    %cst_16 = arith.constant dense<0.000000e+00> : vector<8x128xf32>
    %25 = tpu.matmul %23, %24, %cst_16 {dimension_numbers = #tpu.dot_dimension_numbers<[1], [0], [0], [1], [0, 0, 1, 1], [], []>} : vector<8x256xbf16>, vector<256x128xbf16>, vector<8x128xf32> -> vector<8x128xf32>
    %c0_17 = arith.constant 0 : index
    %c0_18 = arith.constant 0 : index
    %26 = vector.load %arg7[%c0_17, %c0_18] : memref<1x128xf32, #tpu.memory_space<vmem>>, vector<1x128xf32>
    %27 = vector.broadcast %26 : vector<1x128xf32> to vector<8x128xf32>
    %28 = arith.addf %25, %27 : vector<8x128xf32>
    %cst_19 = arith.constant 0.000000e+00 : f32
    %29 = vector.broadcast %cst_19 : f32 to vector<8x128xf32>
    %30 = arith.cmpf ogt, %28, %29 : vector<8x128xf32>
    %cst_20 = arith.constant 1.000000e-01 : f32
    %31 = vector.broadcast %cst_20 : f32 to vector<8x128xf32>
    %32 = arith.mulf %31, %28 : vector<8x128xf32>
    %33 = arith.select %30, %28, %32 : vector<8x128xi1>, vector<8x128xf32>
    %c0_21 = arith.constant 0 : index
    %c0_22 = arith.constant 0 : index
    %34 = vector.load %arg8[%c0_21, %c0_22] : memref<1x128xf32, #tpu.memory_space<vmem>>, vector<1x128xf32>
    %35 = vector.broadcast %34 : vector<1x128xf32> to vector<8x128xf32>
    %36 = arith.mulf %33, %35 : vector<8x128xf32>
    %cst_23 = arith.constant dense<0.000000e+00> : vector<8xf32>
    %37 = vector.multi_reduction <add>, %36, %cst_23 [1] : vector<8x128xf32> to vector<8xf32>
    %38 = vector.shape_cast %37 : vector<8xf32> to vector<8x1xf32>
    %c0_24 = arith.constant 0 : index
    %c0_25 = arith.constant 0 : index
    %39 = vector.load %arg9[%c0_24, %c0_25] : memref<1x1xf32, #tpu.memory_space<vmem>>, vector<1x1xf32>
    %40 = vector.broadcast %39 : vector<1x1xf32> to vector<8x1xf32>
    %41 = arith.addf %38, %40 : vector<8x1xf32>
    %c0_26 = arith.constant 0 : index
    %c0_27 = arith.constant 0 : index
    %42 = vector.load %arg10[%c0_26, %c0_27] : memref<8x1xf32, #tpu.memory_space<vmem>>, vector<8x1xf32>
    tpu.vector_store %arg10[%c0_26, %c0_27], %41 {strides = array<i32>} : memref<8x1xf32, #tpu.memory_space<vmem>>, vector<8x1xf32>,
    return
  }
  func.func @transform_0(%arg0: i32) -> (i32, i32) {
    %c0_i32 = arith.constant 0 : i32
    %c0_i32_0 = arith.constant 0 : i32
    return %arg0, %c0_i32 : i32, i32
  }
  func.func @transform_1(%arg0: i32) -> (i32, i32) {
    %c0_i32 = arith.constant 0 : i32
    %c0_i32_0 = arith.constant 0 : i32
    %c0_i32_1 = arith.constant 0 : i32
    return %c0_i32, %c0_i32_0 : i32, i32
  }
  func.func @transform_2(%arg0: i32) -> (i32, i32) {
    %c0_i32 = arith.constant 0 : i32
    %c0_i32_0 = arith.constant 0 : i32
    %c0_i32_1 = arith.constant 0 : i32
    return %c0_i32, %c0_i32_0 : i32, i32
  }
  func.func @transform_3(%arg0: i32) -> (i32, i32) {
    %c0_i32 = arith.constant 0 : i32
    %c0_i32_0 = arith.constant 0 : i32
    %c0_i32_1 = arith.constant 0 : i32
    return %c0_i32, %c0_i32_0 : i32, i32
  }
  func.func @transform_4(%arg0: i32) -> (i32, i32) {
    %c0_i32 = arith.constant 0 : i32
    %c0_i32_0 = arith.constant 0 : i32
    %c0_i32_1 = arith.constant 0 : i32
    return %c0_i32, %c0_i32_0 : i32, i32
  }
  func.func @transform_5(%arg0: i32) -> (i32, i32) {
    %c0_i32 = arith.constant 0 : i32
    %c0_i32_0 = arith.constant 0 : i32
    %c0_i32_1 = arith.constant 0 : i32
    return %c0_i32, %c0_i32_0 : i32, i32
  }
  func.func @transform_6(%arg0: i32) -> (i32, i32) {
    %c0_i32 = arith.constant 0 : i32
    %c0_i32_0 = arith.constant 0 : i32
    %c0_i32_1 = arith.constant 0 : i32
    return %c0_i32, %c0_i32_0 : i32, i32
  }
  func.func @transform_7(%arg0: i32) -> (i32, i32) {
    %c0_i32 = arith.constant 0 : i32
    %c0_i32_0 = arith.constant 0 : i32
    %c0_i32_1 = arith.constant 0 : i32
    return %c0_i32, %c0_i32_0 : i32, i32
  }
  func.func @transform_8(%arg0: i32) -> (i32, i32) {
    %c0_i32 = arith.constant 0 : i32
    %c0_i32_0 = arith.constant 0 : i32
    %c0_i32_1 = arith.constant 0 : i32
    return %c0_i32, %c0_i32_0 : i32, i32
  }
  func.func @transform_9(%arg0: i32) -> (i32, i32) {
    %c0_i32 = arith.constant 0 : i32
    %c0_i32_0 = arith.constant 0 : i32
    return %arg0, %c0_i32 : i32, i32
  }
}

</mosaic_0001>

<bundles_post_ra>
// kernel: tpu_custom_call.1
= control target key start
LH: loop header
LB: loop body
LE: loop exit
PB: predicated region body
PF: predicated region fallthrough
CT: control target
= control target key end

     0   :  { %s2172_s0 = inlined_call_operand.hbm [shape: f32[16,784], index: 0, kind: input, shape index: {}]   ;;  %s2173_s1 = inlined_call_operand.hbm [shape: bf16[784,128], index: 1, kind: input, shape index: {}]   ;;  %s2174_s2 = inlined_call_operand.vmem [shape: f32[1,128], index: 2, kind: input, shape index: {}]   ;;  %s2175_s3 = inlined_call_operand.hbm [shape: bf16[128,256], index: 3, kind: input, shape index: {}]   ;;  %s2176_s4 = inlined_call_operand.vmem [shape: f32[1,256], index: 4, kind: input, shape index: {}]   ;;  %s2177_s5 = inlined_call_operand.hbm [shape: bf16[256,128], index: 5, kind: input, shape index: {}]   ;;  %s2178_s6 = inlined_call_operand.vmem [shape: f32[1,128], index: 6, kind: input, shape index: {}]   ;;  %s2179_s7 = inlined_call_operand.vmem [shape: f32[1,128], index: 7, kind: input, shape index: {}]   ;;  %s2180_s8 = inlined_call_operand.<no memory space> [shape: f32[1,1], index: 8, kind: input, shape index: {}]   ;;  %s2181_s9 = inlined_call_operand.vmem [shape: f32[16,1], index: 9, kind: output, shape index: {}]  }
   0x1   :  { %v14_v0 = vstv %s2180_s8 }
   0x2   :  { %15 = vst [vmem:[#allocation2] sm:$0x1] %v14_v0 }
   0x3   :  { %16 = vsyncpa [#allocation4], 0 }
   0x4   :  { %18 = vsyncpa [#allocation4 + $0x1], 0 }
   0x5   :  { %19 = vsyncpa [#allocation6], 0 }
   0x6   :  { %20 = vsyncpa [#allocation9], 0  ;;  %s2005_s11 = smov 0   ;;  %s2007_s12 = smov 0  }
   0x7   :  { %s2009_s13 = smov 0   ;;  %s2011_s14 = smov 0  }
   0x8 LB: > { %s2024_s8 = sadd.s32 4294967295, %s1939_s14   ;;  %p46_p0 = scmp.ne.s32.totalorder %s1931_s12, %s1927_s11  ;;  %s1939_s14 = sphi %s2011_s14, %s2198_s14   ;;  %s1935_s13 = sphi %s2009_s13, %s2197_s13   ;;  %s1931_s12 = sphi %s2007_s12, %s2196_s12   ;;  %s1927_s11 = sphi %s2005_s11, %s2195_s11  }
   0x9   : > { %p2182_p1 = scmp.eq.s32.totalorder %s2024_s8, 0  ;;  %p1427_p2 = scmp.ge.s32.totalorder %s1939_s14, 1 }
   0xa   : > { %p251_p3 = scmp.lt.s32.totalorder %s1939_s14, 3  ;;  %s1941_s17 = smov [#allocation5]  }
   0xb   : > { %p2032_p4 = por %p2182_p1, %p46_p0  ;;  %s263_s18 = sshll.u32 %s1941_s17, 4  ;;  %s264_s18 = int_to_ptr.vmem [resolvable:$true] %s263_s18 }
   0xc   : > { %p2036_p5 = pnand %p1427_p2, %p251_p3  ;;  %s1942_s20 = smov [#allocation7]  }
   0xd   : > { %s2185_s15 = scalar_select %p2032_p4, 1, 0 }
   0xe   : > { %s2186_s16 = scalar_select %p2036_p5, 1, 0 }
   0xf   : > { %p1639_p6 = pneg %p2036_p5  ;;  %s279_s21 = sshll.u32 %s1942_s20, 4  ;;  %s280_s21 = int_to_ptr.vmem [resolvable:$true] %s279_s21 }
  0x10   : > { %s1802_s22 = scalar_lea.vmem %s264_s18, 6272  ;;  %p1810_p12 = scmp.lt.s32.totalorder %s264_s18, %s264_s18 }
  0x11   : > { %p2044_p7 = pnand %p1639_p6, %p2182_p1  ;;  %p1803_p9 = scmp.ne.s32.totalorder %s264_s18, %s1802_s22 }
  0x12   : > { %p1811_p13 = scmp.lt.s32.totalorder %s1802_s22, %s1802_s22 }
  0x13   : > { %p1793_p8 = pneg %p2044_p7 }
  0x14   : > { %p1812_p0 = por %p1811_p13, %p1810_p12 }
  0x15   : > { %p1805_p10 = pnand %p1803_p9, %p1793_p8 }
  0x17   : > { %p1806_p11 = pneg %p1805_p10 }
  0x19   : > { %p1813_p2 = pnand %p1812_p0, %p1806_p11 }
  0x1b   : > { %1816 = shalt.err (!%p1813_p2)
}
  0x1c   : > { %s1943_s23 = smov 64   ;;  %s1944_s24 = smov 4  }
  0x1d   : > { %1642 = dma.hbm_to_vmem [thread:$0]  (!%p2044_p7), %s2173_s1, 6272, %s264_s18, [#allocation6], %s1943_s23, %s1943_s23, %s1944_s24  }
  0x1e   : > { %s1828_s27 = scalar_lea.vmem %s280_s21, 2048  ;;  %p1836_p10 = scmp.lt.s32.totalorder %s280_s21, %s280_s21 }
  0x1f   : > { %p1829_p3 = scmp.ne.s32.totalorder %s280_s21, %s1828_s27  ;;  %p1837_p11 = scmp.lt.s32.totalorder %s1828_s27, %s1828_s27 }
  0x21   : > { %p1831_p6 = pnand %p1829_p3, %p1793_p8  ;;  %p1838_p12 = por %p1837_p11, %p1836_p10 }
  0x23   : > { %p1832_p9 = pneg %p1831_p6 }
  0x25   : > { %p1839_p13 = pnand %p1838_p12, %p1832_p9 }
  0x27   : > { %1842 = shalt.err (!%p1839_p13)
}
  0x28   : > { %s1945_s28 = smov 128   ;;  %s1946_s29 = smov 8  }
  0x29   : > { %1645 = dma.hbm_to_vmem [thread:$0]  (!%p2044_p7), %s2175_s3, 2048, %s280_s21, [#allocation6], %s1945_s28, %s1945_s28, %s1946_s29  }
  0x2a   : > { %s1947_s11 = smov [#allocation8]   ;;  %s2070_s18 = sadd.s32 1, %s1939_s14  }
  0x2b   : > { %s295_s17 = sshll.u32 %s1947_s11, 4  ;;  %s296_s17 = int_to_ptr.vmem [resolvable:$true] %s295_s17 }
  0x2c   : > { %s1854_s20 = scalar_lea.vmem %s296_s17, 2048  ;;  %p1862_p6 = scmp.lt.s32.totalorder %s296_s17, %s296_s17 }
  0x2d   : > { %p1855_p0 = scmp.ne.s32.totalorder %s296_s17, %s1854_s20  ;;  %p1863_p9 = scmp.lt.s32.totalorder %s1854_s20, %s1854_s20 }
  0x2f   : > { %p1857_p2 = pnand %p1855_p0, %p1793_p8  ;;  %p1864_p10 = por %p1863_p9, %p1862_p6 }
  0x31   : > { %p1858_p3 = pneg %p1857_p2 }
  0x33   : > { %p1865_p11 = pnand %p1864_p10, %p1858_p3 }
  0x35   : > { %1868 = shalt.err (!%p1865_p11)
}
  0x36   : > { %1648 = dma.hbm_to_vmem [thread:$0]  (!%p2044_p7), %s2177_s5, 2048, %s296_s17, [#allocation9], %s1943_s23, %s1943_s23, %s1944_s24  }
  0x37   : > { %s30_s25 = ssub.s32 %s1939_s14, %s2070_s18  ;;  %s33_s26 = sadd.s32 1, %s1935_s13 }
  0x38   : > { %p31_p8 = scmp.eq.s32.totalorder %s30_s25, 0  ;;  %p40_p12 = scmp.ne.s32.totalorder %s1935_s13, %s1931_s12 }
  0x39   : > { %p41_p13 = scmp.eq.s32.totalorder %s1939_s14, 0  ;;  %p1656_p0 = scmp.lt.s32.totalorder %s1939_s14, 2 }
  0x3a   : > { %s2091_s19 = scalar_select %p31_p8, %s1935_s13, %s33_s26  }
  0x3b   : > { %p42_p2 = por %p41_p13, %p40_p12  ;;  %s318_s27 = sand.u32 1, %s1935_s13  }
  0x3c   : > { %s1622_s28 = smul.u32 56, %s318_s27  ;;  %s319_s20 = scalar_lea.sflag [#allocation4], %s318_s27 }
  0x3d   : > { %s1623_s29 = smul.u32 896, %s1939_s14  ;;  %p2095_p3 = pnand %p1656_p0, %p42_p2 }
  0x3e   : > { %s322_s24 = scalar_lea.vmem [#allocation3], %s1622_s28  ;;  %s1874_s25 = scalar_lea.hbm %s2172_s0, 1792 }
  0x3f   : > { %s2102_s23 = scalar_lea.hbm %s2172_s0, %s1623_s29  ;;  %s330_s17 = sshll.u32 %s322_s24, 4  ;;  %s331_s17 = int_to_ptr.vmem [resolvable:$true] %s330_s17 }
  0x40   : > { %s1869_s21 = scalar_lea.hbm %s2102_s23, 896  ;;  %p1871_p6 = pneg %p2095_p3 }
  0x41   : > { %p1870_p7 = scmp.ne.s32.totalorder %s2102_s23, %s1869_s21  ;;  %p1875_p11 = scmp.lt.s32.totalorder %s2102_s23, %s2172_s0 }
  0x42   : > { %p1876_p8 = scmp.lt.s32.totalorder %s1874_s25, %s1869_s21 }
  0x43   : > { %p1872_p9 = pnand %p1871_p6, %p1870_p7 }
  0x44   : > { %p1877_p12 = por %p1876_p8, %p1875_p11 }
  0x45   : > { %p1873_p10 = pneg %p1872_p9 }
  0x47   : > { %p1878_p13 = pnand %p1877_p12, %p1873_p10 }
  0x49   : > { %1881 = shalt.err (!%p1878_p13)
}
  0x4a   : > { %s1882_s28 = scalar_lea.vmem %s331_s17, 896  ;;  %s1948_s27 = smov [#allocation3]  }
  0x4b   : > { %p1883_p0 = scmp.ne.s32.totalorder %s331_s17, %s1882_s28  ;;  %s1887_s10 = sshll.u32 %s1948_s27, 4  ;;  %s1888_s10 = int_to_ptr.vmem [resolvable:$false] %s1887_s10 }
  0x4c   : > { %s1889_s11 = scalar_lea.vmem %s1888_s10, 1792  ;;  %p1890_p7 = scmp.lt.s32.totalorder %s331_s17, %s1888_s10 }
  0x4d   : > { %p1885_p2 = pnand %p1883_p0, %p1871_p6  ;;  %p1891_p9 = scmp.lt.s32.totalorder %s1889_s11, %s1882_s28 }
  0x4f   : > { %p1886_p1 = pneg %p1885_p2  ;;  %p1892_p4 = por %p1891_p9, %p1890_p7 }
  0x51   : > { %p1893_p5 = pnand %p1892_p4, %p1886_p1 }
  0x53   : > { %1896 = shalt.err (!%p1893_p5)
}
  0x54   : > { %1652 = dma.hbm_to_vmem [thread:$0]  (!%p2095_p3), %s2102_s23, 896, %s331_s17, %s319_s20  }
  0x55   : > { %p2189_p10 = scmp.ne.s32.totalorder %s2186_s16, 0 }
  0x56   : > { %s341_s24 = sand.u32 (!%p2189_p10), 1, %s1931_s12   ;;  %p2190_p6 = scmp.ne.s32.totalorder (!%p2189_p10), %s2185_s15, 0 }
  0x57   : > { %339 = sbr.rel (%p2189_p10) target bundleno = 918 (0x396), region = 56  ;;  %s342_s14 = scalar_lea.sflag (!%p2189_p10), [#allocation4], %s341_s24 }
  0x58   : > { %s1624_s21 = smul.u32 (!%p2189_p10), 56, %s341_s24 }
  0x5a   : > { %s2121_s22 = scalar_lea.vmem (!%p2189_p10), [#allocation3], %s1624_s21 }
  0x5c   : > { %1914 = dma.done.wait (%p2190_p6), %s342_s14, 896  }
  0x5d   : > { %1916 = vsyncadd (%p2190_p6), %s342_s14, 4294966400  ;;  %p2191_p1 = scmp.eq.s32.totalorder %s2024_s8, 0 }
  0x5f   : > { %1918 = dma.done.wait (%p2191_p1), [#allocation6], 8320   ;;  %p2192_p4 = pmov %p2191_p1 }
  0x60   : > { %p2193_p5 = pmov %p2191_p1 }
  0x61   : > { %1920 = vsyncadd (%p2192_p4), [#allocation6], 4294958976 }
  0x62   : > { %1922 = dma.done.wait (%p2193_p5), [#allocation9], 2048   ;;  %p2194_p3 = pmov %p2191_p1 }
  0x63   : > { %v1702_v1 = vld [vmem:[#allocation5 + $0x78] sm:$0xff]   ;;  %v1706_v5 = vld [vmem:[#allocation5 + $0x70] sm:$0xff]   ;;  %v1710_v9 = vld [vmem:[#allocation5 + $0x68] sm:$0xff]   ;;  %v1949_v45 = vmov 0.0   ;;  %vm1950_vm0 = vmmov 0   ;;  %vm809_vm1 = vcmask 130048  }
  0x64   : > { %1924 = vsyncadd (%p2194_p3), [#allocation9], 4294965248  ;;  %v1703_v2 = vld [vmem:[#allocation5 + $0x38] sm:$0xff]   ;;  %1526 = vmatprep.subr.bf16.mxu0 %v1702_v1  ;;  %v1707_v6 = vld [vmem:[#allocation5 + $0x30] sm:$0xff]   ;;  %p391_p11 = scmp.lt.s32.totalorder %s2024_s8, 1  ;;  %vm1330_vm6 = vcmask 7168  }
  0x65   : > { %v1704_v3 = vld [vmem:[#allocation5 + $0xf8] sm:$0xff]   ;;  %1527 = vmatpush3.bf16.msra.mxu0 %v1703_v2  ;;  %v1708_v7 = vld [vmem:[#allocation5 + $0xf0] sm:$0xff]   ;;  %v1711_v10 = vld [vmem:[#allocation5 + $0x28] sm:$0xff]  }
  0x66   : > { %v1705_v4 = vld [vmem:[#allocation5 + $0xb8] sm:$0xff]   ;;  %1548 = vmatprep.subr.bf16.mxu1 %v1704_v3  ;;  %1528 = vmatprep.subr.bf16.mxu0 %v1706_v5  ;;  %v1709_v8 = vld [vmem:[#allocation5 + $0xb0] sm:$0xff]   ;;  %v1712_v11 = vld [vmem:[#allocation5 + $0xe8] sm:$0xff]   ;;  %s2200_s8 = smov (!%p391_p11, %s2024_s8), 1 }
  0x67   : > { %1549 = vmatpush3.bf16.msra.mxu1 %v1705_v4  ;;  %v1713_v12 = vld [vmem:[#allocation5 + $0xa8] sm:$0xff]   ;;  %v1714_v13 = vld [vmem:[#allocation5 + $0x60] sm:$0xff]   ;;  %v1718_v17 = vld [vmem:[#allocation5 + $0x58] sm:$0xff]   ;;  %s1437_s29 = sshll.u32 %s2200_s8, 3 }
  0x68   : > { %1550 = vmatprep.subr.bf16.mxu1 %v1708_v7  ;;  %v1715_v14 = vld [vmem:[#allocation5 + $0x20] sm:$0xff]   ;;  %v1719_v18 = vld [vmem:[#allocation5 + $0x18] sm:$0xff]   ;;  %v1722_v21 = vld [vmem:[#allocation5 + $0x50] sm:$0xff]   ;;  %s394_s10 = scalar_lea.vmem %s2181_s9, %s1437_s29 }
  0x69   : > { %1529 = vmatpush3.bf16.msra.mxu0 %v1707_v6  ;;  %v1716_v15 = vld [vmem:[#allocation5 + $0xe0] sm:$0xff]   ;;  %v1720_v19 = vld [vmem:[#allocation5 + $0xd8] sm:$0xff]   ;;  %v1723_v22 = vld [vmem:[#allocation5 + $0x10] sm:$0xff]  }
  0x6a   : > { %1530 = vmatprep.subr.bf16.mxu0 %v1710_v9  ;;  %v1717_v16 = vld [vmem:[#allocation5 + $0xa0] sm:$0xff]   ;;  %v1721_v20 = vld [vmem:[#allocation5 + $0x98] sm:$0xff]   ;;  %v1724_v23 = vld [vmem:[#allocation5 + $0xd0] sm:$0xff]  }
  0x6b   : > { %1551 = vmatpush3.bf16.msra.mxu1 %v1709_v8  ;;  %v1725_v24 = vld [vmem:[#allocation5 + $0x90] sm:$0xff]   ;;  %v1726_v25 = vld [vmem:[#allocation5 + $0x48] sm:$0xff]   ;;  %v1730_v29 = vld [vmem:[#allocation5 + $0x40] sm:$0xff]  }
  0x6c   : > { %1552 = vmatprep.subr.bf16.mxu1 %v1712_v11  ;;  %v1727_v26 = vld [vmem:[#allocation5 + $0x8] sm:$0xff]   ;;  %v1731_v30 = vld [vmem:[#allocation5] sm:$0xff]   ;;  %v397_v32 = vld [vmem:[%s2121_s22 + $0x8] sm:$0xff] }
  0x6d   : > { %1531 = vmatpush3.bf16.msra.mxu0 %v1711_v10  ;;  %v1728_v27 = vld [vmem:[#allocation5 + $0xc8] sm:$0xff]   ;;  %v1732_v31 = vld [vmem:[#allocation5 + $0xc0] sm:$0xff]   ;;  %v404_v33 = vpack.c.bf16 %v397_v32, %v397_v32  ;;  %v1734_v37 = vld [vmem:[#allocation5 + $0x178] sm:$0xff]  }
  0x6e   : > { %1532 = vmatprep.subr.bf16.mxu0 %v1714_v13  ;;  %v1729_v28 = vld [vmem:[#allocation5 + $0x88] sm:$0xff]   ;;  %v1733_v34 = vld [vmem:[#allocation5 + $0x80] sm:$0xff]   ;;  %v1735_v40 = vld [vmem:[#allocation5 + $0x138] sm:$0xff]  }
  0x6f   : > { %1553 = vmatpush3.bf16.msra.mxu1 %v1713_v12  ;;  %v396_v35 = vld [vmem:[%s2121_s22] sm:$0xff]  ;;  %v399_v38 = vld [vmem:[%s2121_s22 + $0x18] sm:$0xff]  ;;  %845 = vmatprep.mubr.bf16.mxu0 %v404_v33  ;;  %v398_v41 = vld [vmem:[%s2121_s22 + $0x10] sm:$0xff] }
  0x70   : > { %1554 = vmatprep.subr.bf16.mxu1 %v1716_v15  ;;  %v403_v36 = vpack.c.bf16 %v396_v35, %v396_v35  ;;  %v406_v39 = vpack.c.bf16 %v399_v38, %v399_v38  ;;  %v405_v42 = vpack.c.bf16 %v398_v41, %v398_v41  ;;  %v1736_v43 = vld [vmem:[#allocation5 + $0x170] sm:$0xff]   ;;  %v1738_v46 = vld [vmem:[#allocation5 + $0x168] sm:$0xff]   ;;  %v1740_v48 = vld [vmem:[#allocation5 + $0x160] sm:$0xff]  }
  0x71   : > { %1533 = vmatpush3.bf16.msra.mxu0 %v1715_v14  ;;  %v1737_v44 = vld [vmem:[#allocation5 + $0x130] sm:$0xff]   ;;  %v1739_v47 = vld [vmem:[#allocation5 + $0x128] sm:$0xff]   ;;  %v1741_v49 = vld [vmem:[#allocation5 + $0x120] sm:$0xff]  }
  0x72   : > { %1534 = vmatprep.subr.bf16.mxu0 %v1718_v17  ;;  %885 = vmatprep.mubr.bf16.mxu1 %v406_v39  ;;  %v1742_v50 = vld [vmem:[#allocation5 + $0x158] sm:$0xff]   ;;  %v1744_v52 = vld [vmem:[#allocation5 + $0x150] sm:$0xff]   ;;  %v1750_v54 = vld [vmem:[#allocation5 + $0x180] sm:$0xff]   ;;  %v1951_v17 = vmov 0  }
  0x73   : > { %1555 = vmatpush3.bf16.msra.mxu1 %v1717_v16  ;;  %v1743_v51 = vld [vmem:[#allocation5 + $0x118] sm:$0xff]   ;;  %v1745_v53 = vld [vmem:[#allocation5 + $0x110] sm:$0xff]   ;;  %v1746_v56 = vld [vmem:[#allocation5 + $0x148] sm:$0xff]  }
  0x74   : > { %1556 = vmatprep.subr.bf16.mxu1 %v1720_v19  ;;  %v401_v55 = vld [vmem:[%s2121_s22 + $0x28] sm:$0xff]  ;;  %v402_v58 = vld [vmem:[%s2121_s22 + $0x30] sm:$0xff]  ;;  %v1747_v60 = vld [vmem:[#allocation5 + $0x108] sm:$0xff]  }
  0x75   : > { %1535 = vmatpush3.bf16.msra.mxu0 %v1719_v18  ;;  %v408_v57 = vpack.c.bf16 %v401_v55, %v401_v55  ;;  %v409_v59 = vpack.c.bf16 %v402_v58, %v402_v58  ;;  %v1748_v61 = vld [vmem:[#allocation5 + $0x140] sm:$0xff]   ;;  %v400_v63 = vld [vmem:[%s2121_s22 + $0x20] sm:$0xff] }
  0x76   : > { %1536 = vmatprep.subr.bf16.mxu0 %v1722_v21  ;;  %v1749_v62 = vld [vmem:[#allocation5 + $0x100] sm:$0xff]   ;;  %v407_v0 = vpack.c.bf16 %v400_v63, %v400_v63  ;;  %v1756_v3 = vld [vmem:[#allocation7 + $0x64] ss:$8 sps:$4 sm:$0xff]   ;;  %v1754_v4 = vld [vmem:[#allocation7 + $0x60] ss:$8 sps:$4 sm:$0xff]  }
  0x77   : > { %1557 = vmatpush3.bf16.msra.mxu1 %v1721_v20  ;;  %v1751_v1 = vld [vmem:[#allocation7 + $0x70] ss:$8 sps:$4 sm:$0xff]   ;;  %v1753_v2 = vld [vmem:[#allocation7 + $0x74] ss:$8 sps:$4 sm:$0xff]   ;;  %v1762_v7 = vld [vmem:[#allocation7 + $0x44] ss:$8 sps:$4 sm:$0xff]  }
  0x78   : > { %1558 = vmatprep.subr.bf16.mxu1 %v1724_v23  ;;  %v1759_v5 = vld [vmem:[#allocation7 + $0x54] ss:$8 sps:$4 sm:$0xff]   ;;  %v1757_v6 = vld [vmem:[#allocation7 + $0x50] ss:$8 sps:$4 sm:$0xff]   ;;  %v1760_v8 = vld [vmem:[#allocation7 + $0x40] ss:$8 sps:$4 sm:$0xff]  }
  0x79   : > { %1537 = vmatpush3.bf16.msra.mxu0 %v1723_v22  ;;  %v1765_v9 = vld [vmem:[#allocation7 + $0x34] ss:$8 sps:$4 sm:$0xff]   ;;  %v1763_v10 = vld [vmem:[#allocation7 + $0x30] ss:$8 sps:$4 sm:$0xff]   ;;  %v1768_v11 = vld [vmem:[#allocation7 + $0x24] ss:$8 sps:$4 sm:$0xff]  }
  0x7a   : > { %1538 = vmatprep.subr.bf16.mxu0 %v1726_v25  ;;  %v1766_v12 = vld [vmem:[#allocation7 + $0x20] ss:$8 sps:$4 sm:$0xff]   ;;  %v1771_v13 = vld [vmem:[#allocation7 + $0x14] ss:$8 sps:$4 sm:$0xff]   ;;  %v1769_v14 = vld [vmem:[#allocation7 + $0x10] ss:$8 sps:$4 sm:$0xff]  }
  0x7b   : > { %1559 = vmatpush3.bf16.msra.mxu1 %v1725_v24  ;;  %v1772_v15 = vld [vmem:[#allocation7] ss:$8 sps:$4 sm:$0xff]   ;;  %v1774_v16 = vld [vmem:[#allocation7 + $0x4] ss:$8 sps:$4 sm:$0xff]   ;;  %v1775_v18 = vld [vmem:[#allocation8 + $0x78] sm:$0xff]  }
  0x7c   : > { %1560 = vmatprep.subr.bf16.mxu1 %v1728_v27  ;;  %v1776_v19 = vld [vmem:[#allocation8 + $0x38] sm:$0xff]   ;;  %v1777_v20 = vld [vmem:[#allocation8 + $0x70] sm:$0xff]   ;;  %v1779_v22 = vld [vmem:[#allocation8 + $0x68] sm:$0xff]  }
  0x7d   : > { %1539 = vmatpush3.bf16.msra.mxu0 %v1727_v26  ;;  %v1778_v21 = vld [vmem:[#allocation8 + $0x30] sm:$0xff]   ;;  %v1780_v23 = vld [vmem:[#allocation8 + $0x28] sm:$0xff]   ;;  %v1781_v24 = vld [vmem:[#allocation8 + $0x60] sm:$0xff]  }
  0x7e   : > { %1540 = vmatprep.subr.bf16.mxu0 %v1730_v29  ;;  %v1782_v25 = vld [vmem:[#allocation8 + $0x20] sm:$0xff]   ;;  %v1783_v26 = vld [vmem:[#allocation8 + $0x58] sm:$0xff]   ;;  %v1788_v58 = vld [vmem:[#allocation8 + $0x8] sm:$0xff]  }
  0x7f   : > { %1561 = vmatpush3.bf16.msra.mxu1 %v1729_v28  ;;  %v1784_v27 = vld [vmem:[#allocation8 + $0x18] sm:$0xff]   ;;  %v1785_v28 = vld [vmem:[#allocation8 + $0x50] sm:$0xff]  }
  0x80   : > { %1562 = vmatprep.subr.bf16.mxu1 %v1732_v31 }
  0x81   : > { %1541 = vmatpush3.bf16.msra.mxu0 %v1731_v30 }
  0x82   : > { %1570 = vmatprep.subr.bf16.mxu0 %v1734_v37 }
  0x83   : > { %1563 = vmatpush3.bf16.msra.mxu1 %v1733_v34 }
  0x84   : > { %846 = vmatmul.mubr.bf16.vlgmr.msra.gmra.mxu0 %v403_v36  ;;  %1616 = vmatprep.subr.bf16.mxu1 %v1949_v45 }
  0x85   : > { %1571 = vmatpush3.bf16.msra.mxu0 %v1735_v40  ;;  %925 = vmatprep.mubr.bf16.mxu0 %v408_v57  ;;  %v1787_v57 = vld [vmem:[#allocation8 + $0x48] sm:$0xff]  }
  0x86   : > { %886 = vmatmul.mubr.bf16.vlgmr.msra.gmra.mxu1 %v405_v42  ;;  %1572 = vmatprep.subr.bf16.mxu0 %v1736_v43  ;;  %v1438_v42 = vld [vmem:[%s2174_s2] ss:$0 sm:$0xff] }
  0x87   : > { %1618 = vmatprep.mubr.msk.bf16.mxu1 %vm1950_vm0, %v1949_v45  ;;  %1617 = vmatpush3.bf16.msra.mxu1 %v1750_v54 }
  0x88   : > { %1085 = vmatprep.subr.bf16.mxu1 %v1753_v2 }
  0x89   : > { %1573 = vmatpush3.bf16.msra.mxu0 %v1737_v44 }
  0x8a   : > { %1574 = vmatprep.subr.bf16.mxu0 %v1738_v46 }
  0x8d   : > { %1575 = vmatpush3.bf16.msra.mxu0 %v1739_v47 }
  0x8e   : > { %1576 = vmatprep.subr.bf16.mxu0 %v1740_v48  ;;  %1619 = vmatmul.mubr.msk.bf16.vlgmr.msra.gmra.mxu1 %vm809_vm1, %v409_v59  ;;  %v1789_v59 = vld [vmem:[#allocation8 + $0x40] sm:$0xff]  }
  0x8f   : > { %1086 = vmatpush1.bf16.msra.mxu1 %v1751_v1  ;;  %1117 = vmatprep.mubr.bf16.mxu1 %v1951_v17  ;;  %v1505_v17 = vld [vmem:[%s2178_s6] ss:$0 sm:$0xff] }
  0x90   : > { %1087 = vmatprep.subr.bf16.mxu1 %v1756_v3 }
  0x91   : > { %1577 = vmatpush3.bf16.msra.mxu0 %v1741_v49 }
  0x92   : > { %1578 = vmatprep.subr.bf16.mxu0 %v1742_v50 }
  0x93   : > { %1088 = vmatpush1.bf16.msra.mxu1 %v1754_v4 }
  0x94   : > { %1089 = vmatprep.subr.bf16.mxu1 %v1759_v5 }
  0x95   : > { %1579 = vmatpush3.bf16.msra.mxu0 %v1743_v51 }
  0x96   : > { %1580 = vmatprep.subr.bf16.mxu0 %v1744_v52 }
  0x97   : > { %1090 = vmatpush1.bf16.msra.mxu1 %v1757_v6 }
  0x98   : > { %1091 = vmatprep.subr.bf16.mxu1 %v1762_v7 }
  0x99   : > { %1581 = vmatpush3.bf16.msra.mxu0 %v1745_v53 }
  0x9a   : > { %1582 = vmatprep.subr.bf16.mxu0 %v1746_v56  ;;  %v1786_v56 = vld [vmem:[#allocation8 + $0x10] sm:$0xff]  }
  0x9b   : > { %1092 = vmatpush1.bf16.msra.mxu1 %v1760_v8 }
  0x9c   : > { %1093 = vmatprep.subr.bf16.mxu1 %v1765_v9 }
  0x9d   : > { %1583 = vmatpush3.bf16.msra.mxu0 %v1747_v60  ;;  %v1790_v60 = vld [vmem:[#allocation8] sm:$0xff]  }
  0x9e   : > { %1584 = vmatprep.subr.bf16.mxu0 %v1748_v61  ;;  %v995_v61 = vlaneseq }
  0x9f   : > { %1094 = vmatpush1.bf16.msra.mxu1 %v1763_v10 }
  0xa0   : > { %1095 = vmatprep.subr.bf16.mxu1 %v1768_v11 }
  0xa1   : > { %1585 = vmatpush3.bf16.msra.mxu0 %v1749_v62  ;;  %v996_v62 = vshrl.u32 %v995_v61, 7 }
  0xa2   : > { %1594 = vmatprep.subr.bf16.mxu0 %v1775_v18 }
  0xa3   : > { %1096 = vmatpush1.bf16.msra.mxu1 %v1766_v12  ;;  %v997_v63 = vsub.s32 0, %v996_v62  ;;  %v1001_v1 = vsub.s32 1, %v996_v62 }
  0xa4   : > { %926 = vmatmul.mubr.bf16.vlgmr.msra.gmra.mxu0 %v407_v0  ;;  %1097 = vmatprep.subr.bf16.mxu1 %v1771_v13  ;;  %v993_v0 = vld [vmem:[%s2176_s4] sm:$0x3] }
  0xa5   : > { %1595 = vmatpush3.bf16.msra.mxu0 %v1776_v19  ;;  %v998_v2 = vrot.slane %v993_v0, %v997_v63  ;;  %v1002_v3 = vrot.slane %v993_v0, %v1001_v1 }
  0xa6   : > { %1596 = vmatprep.subr.bf16.mxu0 %v1777_v20 }
  0xa7   : > { %1098 = vmatpush1.bf16.msra.mxu1 %v1769_v14 }
  0xa8   : > { %1099 = vmatprep.subr.bf16.mxu1 %v1774_v16 }
  0xa9   : > { %1597 = vmatpush3.bf16.msra.mxu0 %v1778_v21 }
  0xaa   : > { %1598 = vmatprep.subr.bf16.mxu0 %v1779_v22 }
  0xab   : > { %1100 = vmatpush1.bf16.msra.mxu1 %v1772_v15 }
  0xad   : > { %1599 = vmatpush3.bf16.msra.mxu0 %v1780_v23 }
  0xae   : > { %1600 = vmatprep.subr.bf16.mxu0 %v1781_v24  ;;  %v1522_v24 = vld [vmem:[%s2179_s7] ss:$0 sm:$0xff] }
  0xb1   : > { %1601 = vmatpush3.bf16.msra.mxu0 %v1782_v25 }
  0xb2   : > { %1602 = vmatprep.subr.bf16.mxu0 %v1783_v26 }
  0xb5   : > { %1603 = vmatpush3.bf16.msra.mxu0 %v1784_v27  ;;  %v1523_v27 = vld [vmem:[#allocation2] ss:$0 sm:$0xff] }
  0xb6   : > { %1604 = vmatprep.subr.bf16.mxu0 %v1785_v28 }
  0xb9   : > { %1605 = vmatpush3.bf16.msra.mxu0 %v1786_v56 }
  0xba   : > { %1606 = vmatprep.subr.bf16.mxu0 %v1787_v57 }
  0xbd   : > { %1607 = vmatpush3.bf16.msra.mxu0 %v1788_v58 }
  0xbe   : > { %1608 = vmatprep.subr.bf16.mxu0 %v1789_v59 }
  0xc1   : > { %1609 = vmatpush3.bf16.msra.mxu0 %v1790_v60 }
 0x144   : > { %v1542_v29 = vpop.f32.mrf.mxu0 }
 0x146   : > { %v1543_v30 = vpop.f32.mrf.mxu0  ;;  %v1564_v31 = vpop.f32.mrf.mxu1 }
 0x147   : > { %v1544_v41 = vadd.f32 %v1543_v30, %v1542_v29 }
 0x148   : > { %v1545_v32 = vpop.f32.mrf.mxu0  ;;  %v1565_v33 = vpop.f32.mrf.mxu1 }
 0x149   : > { %v848_v43 = vadd.f32 %v1544_v41, %v1438_v42  ;;  %v1566_v44 = vadd.f32 %v1565_v33, %v1564_v31 }
 0x14a   : > { %v1546_v34 = vpop.f32.mrf.mxu0  ;;  %v1567_v35 = vpop.f32.mrf.mxu1 }
 0x14b   : > { %v888_v47 = vadd.f32 %v1566_v44, %v848_v43 }
 0x14c   : > { %v1568_v36 = vpop.f32.mrf.mxu1 }
 0x14e   : > { %v967_v37 = vpop.f32.mrf.mxu1 }
 0x150   : > { %v1620_v38 = vpop.f32.mrf.mxu1 }
 0x152   : > { %v970_v39 = vpop.f32.mrf.mxu1 }
 0x154   : > { %v1621_v40 = vpop.f32.mrf.mxu1 }
 0x164   : > { %v1586_v45 = vpop.f32.mrf.mxu0 }
 0x166   : > { %v1587_v46 = vpop.f32.mrf.mxu0 }
 0x167   : > { %v1588_v48 = vadd.f32 %v1587_v46, %v1586_v45 }
 0x168   : > { %v1589_v49 = vpop.f32.mrf.mxu0 }
 0x169   : > { %v928_v50 = vadd.f32 %v1588_v48, %v888_v47 }
 0x16a   : > { %v1590_v51 = vpop.f32.mrf.mxu0 }
 0x16b   : > { %v968_v52 = vadd.f32 %v967_v37, %v928_v50 }
 0x16d   : > { %vm973_vm2 = vcmp.gt.f32.partialorder %v968_v52, 0.0  ;;  %v974_v53 = vmul.f32 0.1, %v968_v52 }
 0x16f   : > { %v975_v54 = vsel %vm973_vm2, %v968_v52, %v974_v53 }
 0x170   : > { %v976_v55 = vpack.c.bf16 %v975_v54, %v975_v54 }
 0x172   : > { %1118 = vmatmul.mubr.bf16.vlgmr.msra.gmra.mxu1 %v976_v55 }
 0x232   : > { %v1119_v4 = vpop.f32.mrf.mxu1 }
 0x233   : > { %v1120_v5 = vadd.f32 %v1119_v4, %v998_v2 }
 0x234   : > { %v1121_v6 = vpop.f32.mrf.mxu1 }
 0x235   : > { %vm1126_vm3 = vcmp.gt.f32.partialorder %v1120_v5, 0.0  ;;  %v1128_v7 = vmul.f32 0.1, %v1120_v5  ;;  %v1122_v8 = vadd.f32 %v1121_v6, %v1002_v3 }
 0x236   : > { %v1123_v9 = vpop.f32.mrf.mxu1 }
 0x237   : > { %vm1127_vm4 = vcmp.gt.f32.partialorder %v1122_v8, 0.0  ;;  %v1129_v10 = vmul.f32 0.1, %v1122_v8  ;;  %v1130_v11 = vsel %vm1126_vm3, %v1120_v5, %v1128_v7 }
 0x238   : > { %v1124_v12 = vpop.f32.mrf.mxu1  ;;  %v1132_v15 = vpack.c.bf16 %v1130_v11, %v1130_v11 }
 0x239   : > { %v1131_v13 = vsel %vm1127_vm4, %v1122_v8, %v1129_v10 }
 0x23a   : > { %v1133_v14 = vpack.c.bf16 %v1131_v13, %v1131_v13 }
 0x23c   : > { %1301 = vmatprep.mubr.bf16.mxu0 %v1133_v14 }
 0x23d   : > { %1302 = vmatmul.mubr.bf16.vlgmr.msra.gmra.mxu0 %v1132_v15 }
 0x2fd   : > { %v1610_v16 = vpop.f32.mrf.mxu0 }
 0x2ff   : > { %v1611_v18 = vpop.f32.mrf.mxu0 }
 0x300   : > { %v1612_v19 = vadd.f32 %v1611_v18, %v1610_v16 }
 0x301   : > { %v1613_v20 = vpop.f32.mrf.mxu0 }
 0x302   : > { %v1304_v21 = vadd.f32 %v1612_v19, %v1505_v17 }
 0x303   : > { %v1614_v22 = vpop.f32.mrf.mxu0 }
 0x304   : > { %vm1309_vm5 = vcmp.gt.f32.partialorder %v1304_v21, 0.0  ;;  %v1310_v23 = vmul.f32 0.1, %v1304_v21 }
 0x306   : > { %v1311_v25 = vsel %vm1309_vm5, %v1304_v21, %v1310_v23 }
 0x307   : > { %v1319_v26 = vmul.f32 %v1522_v24, %v1311_v25 }
 0x309   : > { %1320 = vadd.xlane.f32.xlu0 %v1319_v26 }
 0x392   : > { %v1321_v28 = vpop.xlane.xlu0 %1320 }
 0x393   : > { %v1329_v29 = vadd.f32 %v1523_v27, %v1321_v28 }
 0x395   : > { %1331 = vst.msk [vmem:[%s394_s10] sm:$0xff] %vm1330_vm6, %v1329_v29 }
 0x396 PF: > { %p23_p8 = scmp.ge.s32.totalorder %s2070_s18, 4   ;;  %s2195_s11 = smov %s1931_s12 }
 0x397   : > { %s2196_s12 = smov %s1935_s13  ;;  %s2197_s13 = smov %s2091_s19 }
 0x398   : > { %s2198_s14 = smov %s2070_s18  ;;  %25 = sbr.rel (!%p23_p8) target bundleno = 8 (0x8), region = 108 }
 0x39d   :  { %1351 = vsyncpa [#allocation4], 1 }
 0x39e   :  { %1353 = vsyncpa [#allocation4 + $0x1], 1 }
 0x39f   :  { %1354 = vsyncpa [#allocation6], 1 }
 0x3a0   :  { %1355 = vsyncpa [#allocation9], 1 }

</bundles_post_ra>
